<compile_context>
chip_gen: v7x
topology: tpu7x:2x2x1
jax: 0.10.0
libtpu: 0.0.40
codegen_flags: <defaults>
</compile_context>

<pallas_src>
import functools

import jax
import jax.numpy as jnp
from jax.experimental import pallas as pl
from jax.experimental.pallas import tpu as pltpu


def _round_up(x, m):
    return ((x + m - 1) // m) * m


def decoder_kernel(e_ref, w1_ref, b1_ref, w2_ref, b2_ref, wd_ref, bd_ref, o_ref):
    # Layer 1: (TB, H) @ (H, 256) + b1, ReLU   (f32 accumulation on the MXU).
    h1 = jnp.dot(e_ref[...], w1_ref[...], preferred_element_type=jnp.float32)
    h1 = jnp.maximum(h1 + b1_ref[...], 0.0)
    # Layer 2: (TB, 256) @ (256, 256) + b2, ReLU.
    h2 = jnp.dot(h1.astype(w2_ref.dtype), w2_ref[...],
                 preferred_element_type=jnp.float32)
    h2 = jnp.maximum(h2 + b2_ref[...], 0.0)
    # Folded head: d = logit1 - logit0 = h2 @ (w3[:,1]-w3[:,0]) + (b3[1]-b3[0]).
    d = jnp.dot(h2.astype(wd_ref.dtype), wd_ref[...],
                preferred_element_type=jnp.float32) + bd_ref[...]
    # 2-class softmax == sigmoid of the logit difference. Pure VPU/EUP (exp on the
    # otherwise-idle EUP slot); saturation of exp makes it safe without max-subtraction.
    o_ref[...] = (1.0 / (1.0 + jnp.exp(-d))).astype(o_ref.dtype)


def _batch_tile(B, H, itemsize, block_b, vmem_limit):
    """Largest batch tile that fits the VMEM budget and still yields >= ~4 grid steps."""
    if B < 8:
        return B  # single full-extent block (exempt from the 8-sublane rule)
    row_mult = 16 if (itemsize < 4 and B >= 16) else 8  # bf16 sublane packing
    # Cap so the grid has >= ~4 tiles: enables double-buffered e DMA + v7x 2-TC split.
    pipe_cap = _round_up(pl.cdiv(B, 4), row_mult)
    # VMEM accounting (conservatively charge every operand at 2 pipeline buffers).
    resident = 2 * (H * 256 + 256 * 256 + 256) * itemsize + 2 * (2 * 256 + 1) * 4
    per_row = 2 * H * itemsize      # double-buffered e tile
    per_row += 2 * 256 * 4          # h1 / h2 f32 temporaries
    per_row += 2 * 4 + 8            # double-buffered output column + slack
    budget = int(vmem_limit * 0.75)
    tb_budget = max(8, (budget - resident) // per_row)
    tb = min(tb_budget, block_b, pipe_cap)
    return max(row_mult, (tb // row_mult) * row_mult)


@functools.partial(jax.jit, static_argnames=("block_b", "stream_dtype"))
def classification_decoder(e, w1, b1, w2, b2, w3, b3, *, block_b=2048,
                           stream_dtype=jnp.bfloat16):
    """softmax(MLP(e)): e (B, H) -> (B, 2) float32 probabilities."""
    B, H = e.shape
    stream_dtype = jnp.dtype(stream_dtype)

    # Fold the 2-wide classification head into a single logit-difference column.
    w_d = w3[:, 1:2] - w3[:, 0:1]                                   # (256, 1)
    b_d = (b3[..., 1:2] - b3[..., 0:1]).reshape(1, 1).astype(jnp.float32)

    # Streaming dtype for MXU operands; accumulation stays f32 inside the kernel.
    # TODO(synk): ideally the caller produces e already in bf16 so this cast fuses away.
    e_s = e.astype(stream_dtype)
    w1_s = w1.astype(stream_dtype)
    w2_s = w2.astype(stream_dtype)
    wd_s = w_d.astype(stream_dtype)
    b1_f = b1.astype(jnp.float32)
    b2_f = b2.astype(jnp.float32)

    # Per-chip VMEM budget: v7x 64 MiB -> 56 MiB limit; v5e/v6e 128 MiB -> 96 MiB.
    try:
        vmem_cap = int(pltpu.get_tpu_info().vmem_capacity_bytes)
    except Exception:
        vmem_cap = 64 * 1024 * 1024  # conservative (v7x) fallback
    vmem_limit = max(32 * 1024 * 1024,
                     min(vmem_cap - 8 * 1024 * 1024, 96 * 1024 * 1024))

    TB = _batch_tile(B, H, stream_dtype.itemsize, block_b, vmem_limit)
    n_blocks = pl.cdiv(B, TB)  # ragged last tile: Pallas masks the OOB rows

    weight_bytes = sum(int(a.size) * a.dtype.itemsize
                       for a in (w1_s, b1_f, w2_s, b2_f, wd_s, b_d))
    cost = pl.CostEstimate(
        flops=2 * B * (H * 256 + 256 * 256 + 256),
        transcendentals=B,
        bytes_accessed=int(e_s.size) * e_s.dtype.itemsize + weight_bytes + B * 4,
    )

    const = lambda shape: pl.BlockSpec(shape, lambda i: tuple(0 for _ in shape))

    p1 = pl.pallas_call(
        decoder_kernel,
        out_shape=jax.ShapeDtypeStruct((B, 1), jnp.float32),
        grid_spec=pltpu.PrefetchScalarGridSpec(
            num_scalar_prefetch=0,
            grid=(n_blocks,),
            in_specs=[
                pl.BlockSpec((TB, H), lambda i: (i, 0)),   # e: streamed per batch tile
                const(w1_s.shape), const(b1_f.shape),      # weights/biases: resident
                const(w2_s.shape), const(b2_f.shape),
                const(wd_s.shape), const(b_d.shape),
            ],
            out_specs=pl.BlockSpec((TB, 1), lambda i: (i, 0)),
        ),
        compiler_params=pltpu.CompilerParams(
            dimension_semantics=("parallel",),   # v7x: shard batch tiles over both TCs
            vmem_limit_bytes=int(vmem_limit),
        ),
        cost_estimate=cost,
    )(e_s, w1_s, b1_f, w2_s, b2_f, wd_s, b_d)

    # softmax over 2 classes == [1 - p1, p1]; reference's squeeze(-1) is a no-op.
    return jnp.concatenate([1.0 - p1, p1], axis=-1)


def init_params(key, hidden_dim):
    # Mimic PyTorch nn.Linear default init: U(-1/sqrt(fan_in), 1/sqrt(fan_in)).
    def linear(key, fan_in, fan_out):
        kw, kb = jax.random.split(key)
        bound = 1.0 / jnp.sqrt(fan_in)
        w = jax.random.uniform(kw, (fan_in, fan_out), jnp.float32, -bound, bound)
        b = jax.random.uniform(kb, (1, fan_out), jnp.float32, -bound, bound)
        return w, b

    k1, k2, k3 = jax.random.split(key, 3)
    w1, b1 = linear(k1, hidden_dim, 256)
    w2, b2 = linear(k2, 256, 256)
    w3, b3 = linear(k3, 256, 2)
    return w1, b1, w2, b2, w3, b3


def _reference(e, w1, b1, w2, b2, w3, b3):
    h1 = jnp.maximum(e @ w1 + b1, 0.0)
    h2 = jnp.maximum(h1 @ w2 + b2, 0.0)
    return jax.nn.softmax(h2 @ w3 + b3, axis=-1)


if __name__ == "__main__":
    key = jax.random.PRNGKey(0)
    k_in, k_params = jax.random.split(key)

    batch, hidden_dim = 8, 32
    e = jax.random.normal(k_in, (batch, hidden_dim), dtype=jnp.float32)
    params = init_params(k_params, hidden_dim)

    # 1) Bit-accurate f32 streaming path.
    out_f32 = jax.block_until_ready(
        classification_decoder(e, *params, stream_dtype=jnp.float32))
    ref = _reference(e, *params)
    assert out_f32.shape == (batch, 2)
    assert jnp.allclose(out_f32, ref, atol=1e-5, rtol=1e-5), (
        f"f32 path max abs err {jnp.max(jnp.abs(out_f32 - ref))}")

    # 2) Default bf16 streaming path (f32 accumulation) — looser tolerance.
    out_bf16 = jax.block_until_ready(classification_decoder(e, *params))
    assert out_bf16.shape == (batch, 2)
    assert jnp.allclose(out_bf16, ref, atol=3e-2, rtol=3e-2), (
        f"bf16 path max abs err {jnp.max(jnp.abs(out_bf16 - ref))}")

    # 3) Ragged multi-tile grid (B not a multiple of TB), f32 exactness.
    e2 = jax.random.normal(jax.random.PRNGKey(1), (37, hidden_dim), dtype=jnp.float32)
    out2 = jax.block_until_ready(
        classification_decoder(e2, *params, block_b=16, stream_dtype=jnp.float32))
    ref2 = _reference(e2, *params)
    assert out2.shape == (37, 2)
    assert jnp.allclose(out2, ref2, atol=1e-5, rtol=1e-5), (
        f"ragged f32 path max abs err {jnp.max(jnp.abs(out2 - ref2))}")

    # 4) Larger batch exercising the >=4-tile pipelined grid with default bf16 streaming.
    e3 = jax.random.normal(jax.random.PRNGKey(2), (100, hidden_dim), dtype=jnp.float32)
    out3 = jax.block_until_ready(classification_decoder(e3, *params))
    ref3 = _reference(e3, *params)
    assert out3.shape == (100, 2)
    assert jnp.allclose(out3, ref3, atol=3e-2, rtol=3e-2), (
        f"multi-tile bf16 path max abs err {jnp.max(jnp.abs(out3 - ref3))}")

    print("KERNEL_OK")
</pallas_src>

<mosaic_0001>
module attributes {stable_mosaic.version = 11 : i64} {
  func.func @decoder_kernel(%arg0: i32, %arg1: memref<8x32xf32, #tpu.memory_space<vmem>>, %arg2: memref<32x256xf32, #tpu.memory_space<vmem>>, %arg3: memref<1x256xf32, #tpu.memory_space<vmem>>, %arg4: memref<256x256xf32, #tpu.memory_space<vmem>>, %arg5: memref<1x256xf32, #tpu.memory_space<vmem>>, %arg6: memref<256x1xf32, #tpu.memory_space<vmem>>, %arg7: memref<1x1xf32, #tpu.memory_space<vmem>>, %arg8: memref<8x1xf32, #tpu.memory_space<vmem>>) attributes {dimension_semantics = [#tpu.dimension_semantics<parallel>], iteration_bounds = array<i64: 1>, scalar_prefetch = 0 : i64, scratch_operands = 0 : i64, tpu.core_type = #tpu.core_type<tc>, window_params = [{transform_indices = @transform_0, window_bounds = array<i64: 8, 32>}, {pipeline_mode = #tpu.pipeline_mode<synchronous>, transform_indices = @transform_1, window_bounds = array<i64: 32, 256>}, {pipeline_mode = #tpu.pipeline_mode<synchronous>, transform_indices = @transform_2, window_bounds = array<i64: 1, 256>}, {pipeline_mode = #tpu.pipeline_mode<synchronous>, transform_indices = @transform_3, window_bounds = array<i64: 256, 256>}, {pipeline_mode = #tpu.pipeline_mode<synchronous>, transform_indices = @transform_4, window_bounds = array<i64: 1, 256>}, {pipeline_mode = #tpu.pipeline_mode<synchronous>, transform_indices = @transform_5, window_bounds = array<i64: 256, 1>}, {pipeline_mode = #tpu.pipeline_mode<synchronous>, transform_indices = @transform_6, window_bounds = array<i64: 1, 1>}, {transform_indices = @transform_7, window_bounds = array<i64: 8, 1>}]} {
    %c0 = arith.constant 0 : index
    %c0_0 = arith.constant 0 : index
    %0 = vector.load %arg1[%c0, %c0_0] : memref<8x32xf32, #tpu.memory_space<vmem>>, vector<8x32xf32>
    %c0_1 = arith.constant 0 : index
    %c0_2 = arith.constant 0 : index
    %1 = vector.load %arg2[%c0_1, %c0_2] : memref<32x256xf32, #tpu.memory_space<vmem>>, vector<32x256xf32>
    %cst = arith.constant dense<0.000000e+00> : vector<8x256xf32>
    %2 = tpu.matmul %0, %1, %cst {dimension_numbers = #tpu.dot_dimension_numbers<[1], [0], [0], [1], [0, 0, 1, 1], [], []>} : vector<8x32xf32>, vector<32x256xf32>, vector<8x256xf32> -> vector<8x256xf32>
    %c0_3 = arith.constant 0 : index
    %c0_4 = arith.constant 0 : index
    %3 = vector.load %arg3[%c0_3, %c0_4] : memref<1x256xf32, #tpu.memory_space<vmem>>, vector<1x256xf32>
    %4 = vector.broadcast %3 : vector<1x256xf32> to vector<8x256xf32>
    %5 = arith.addf %2, %4 : vector<8x256xf32>
    %cst_5 = arith.constant 0.000000e+00 : f32
    %6 = vector.broadcast %cst_5 : f32 to vector<8x256xf32>
    %7 = arith.maximumf %5, %6 : vector<8x256xf32>
    %c0_6 = arith.constant 0 : index
    %c0_7 = arith.constant 0 : index
    %8 = vector.load %arg4[%c0_6, %c0_7] : memref<256x256xf32, #tpu.memory_space<vmem>>, vector<256x256xf32>
    %cst_8 = arith.constant dense<0.000000e+00> : vector<8x256xf32>
    %9 = tpu.matmul %7, %8, %cst_8 {dimension_numbers = #tpu.dot_dimension_numbers<[1], [0], [0], [1], [0, 0, 1, 1], [], []>} : vector<8x256xf32>, vector<256x256xf32>, vector<8x256xf32> -> vector<8x256xf32>
    %c0_9 = arith.constant 0 : index
    %c0_10 = arith.constant 0 : index
    %10 = vector.load %arg5[%c0_9, %c0_10] : memref<1x256xf32, #tpu.memory_space<vmem>>, vector<1x256xf32>
    %11 = vector.broadcast %10 : vector<1x256xf32> to vector<8x256xf32>
    %12 = arith.addf %9, %11 : vector<8x256xf32>
    %cst_11 = arith.constant 0.000000e+00 : f32
    %13 = vector.broadcast %cst_11 : f32 to vector<8x256xf32>
    %14 = arith.maximumf %12, %13 : vector<8x256xf32>
    %c0_12 = arith.constant 0 : index
    %c0_13 = arith.constant 0 : index
    %15 = vector.load %arg6[%c0_12, %c0_13] : memref<256x1xf32, #tpu.memory_space<vmem>>, vector<256x1xf32>
    %cst_14 = arith.constant dense<0.000000e+00> : vector<8x1xf32>
    %16 = tpu.matmul %14, %15, %cst_14 {dimension_numbers = #tpu.dot_dimension_numbers<[1], [0], [0], [1], [0, 0, 1, 1], [], []>} : vector<8x256xf32>, vector<256x1xf32>, vector<8x1xf32> -> vector<8x1xf32>
    %c0_15 = arith.constant 0 : index
    %c0_16 = arith.constant 0 : index
    %17 = vector.load %arg7[%c0_15, %c0_16] : memref<1x1xf32, #tpu.memory_space<vmem>>, vector<1x1xf32>
    %18 = vector.broadcast %17 : vector<1x1xf32> to vector<8x1xf32>
    %19 = arith.addf %16, %18 : vector<8x1xf32>
    %cst_17 = arith.constant 0.000000e+00 : f32
    %20 = vector.broadcast %cst_17 : f32 to vector<8x1xf32>
    %21 = arith.subf %20, %19 : vector<8x1xf32>
    %22 = math.exp %21 : vector<8x1xf32>
    %cst_18 = arith.constant 1.000000e+00 : f32
    %23 = vector.broadcast %cst_18 : f32 to vector<8x1xf32>
    %24 = arith.addf %23, %22 : vector<8x1xf32>
    %cst_19 = arith.constant 1.000000e+00 : f32
    %25 = vector.broadcast %cst_19 : f32 to vector<8x1xf32>
    %26 = arith.divf %25, %24 : vector<8x1xf32>
    %c0_20 = arith.constant 0 : index
    %c0_21 = arith.constant 0 : index
    %27 = vector.load %arg8[%c0_20, %c0_21] : memref<8x1xf32, #tpu.memory_space<vmem>>, vector<8x1xf32>
    tpu.vector_store %arg8[%c0_20, %c0_21], %26 {strides = array<i32>} : memref<8x1xf32, #tpu.memory_space<vmem>>, vector<8x1xf32>,
    return
  }
  func.func @transform_0(%arg0: i32) -> (i32, i32) {
    %c0_i32 = arith.constant 0 : i32
    %c0_i32_0 = arith.constant 0 : i32
    return %arg0, %c0_i32 : i32, i32
  }
  func.func @transform_1(%arg0: i32) -> (i32, i32) {
    %c0_i32 = arith.constant 0 : i32
    %c0_i32_0 = arith.constant 0 : i32
    %c0_i32_1 = arith.constant 0 : i32
    return %c0_i32, %c0_i32_0 : i32, i32
  }
  func.func @transform_2(%arg0: i32) -> (i32, i32) {
    %c0_i32 = arith.constant 0 : i32
    %c0_i32_0 = arith.constant 0 : i32
    %c0_i32_1 = arith.constant 0 : i32
    return %c0_i32, %c0_i32_0 : i32, i32
  }
  func.func @transform_3(%arg0: i32) -> (i32, i32) {
    %c0_i32 = arith.constant 0 : i32
    %c0_i32_0 = arith.constant 0 : i32
    %c0_i32_1 = arith.constant 0 : i32
    return %c0_i32, %c0_i32_0 : i32, i32
  }
  func.func @transform_4(%arg0: i32) -> (i32, i32) {
    %c0_i32 = arith.constant 0 : i32
    %c0_i32_0 = arith.constant 0 : i32
    %c0_i32_1 = arith.constant 0 : i32
    return %c0_i32, %c0_i32_0 : i32, i32
  }
  func.func @transform_5(%arg0: i32) -> (i32, i32) {
    %c0_i32 = arith.constant 0 : i32
    %c0_i32_0 = arith.constant 0 : i32
    %c0_i32_1 = arith.constant 0 : i32
    return %c0_i32, %c0_i32_0 : i32, i32
  }
  func.func @transform_6(%arg0: i32) -> (i32, i32) {
    %c0_i32 = arith.constant 0 : i32
    %c0_i32_0 = arith.constant 0 : i32
    %c0_i32_1 = arith.constant 0 : i32
    return %c0_i32, %c0_i32_0 : i32, i32
  }
  func.func @transform_7(%arg0: i32) -> (i32, i32) {
    %c0_i32 = arith.constant 0 : i32
    %c0_i32_0 = arith.constant 0 : i32
    return %arg0, %c0_i32 : i32, i32
  }
}

</mosaic_0001>

<bundles_post_ra>
// kernel: classification_decoder.1
= control target key start
LH: loop header
LB: loop body
LE: loop exit
PB: predicated region body
PF: predicated region fallthrough
CT: control target
= control target key end

     0   :  { %s775_s0 = inlined_call_operand.vmem [shape: f32[8,32], index: 0, kind: input, shape index: {}]   ;;  %s776_s1 = inlined_call_operand.vmem [shape: f32[32,256], index: 1, kind: input, shape index: {}]   ;;  %s777_s2 = inlined_call_operand.vmem [shape: f32[1,256], index: 2, kind: input, shape index: {}]   ;;  %s778_s3 = inlined_call_operand.hbm [shape: f32[256,256], index: 3, kind: input, shape index: {}]   ;;  %s779_s4 = inlined_call_operand.vmem [shape: f32[1,256], index: 4, kind: input, shape index: {}]   ;;  %s780_s5 = inlined_call_operand.vmem [shape: f32[256,1], index: 5, kind: input, shape index: {}]   ;;  %s781_s6 = inlined_call_operand.<no memory space> [shape: f32[1,1], index: 6, kind: input, shape index: {}]   ;;  %s782_s7 = inlined_call_operand.vmem [shape: f32[8,1], index: 7, kind: output, shape index: {}]  }
   0x1   :  { %v12_v0 = vstv %s781_s6 }
   0x2   :  { %13 = vst [vmem:[#allocation2] sm:$0x1] %v12_v0 }
   0x3   :  { %14 = vsyncpa [#allocation4], 0  ;;  %s584_s26 = smov [#allocation3]   ;;  %s560_s30 = scalar_lea.hbm %s778_s3, 8192 }
   0x4   :  { %s26_s27 = sshll.u32 %s584_s26, 4  ;;  %p561_p0 = scmp.ne.s32.totalorder %s778_s3, %s560_s30  ;;  %s27_s27 = int_to_ptr.vmem [resolvable:$true] %s26_s27 }
   0x5   :  { %p564_p1 = scmp.lt.u32.totalorder %s560_s30, %s778_s3 }
   0x7   :  { %p566_p2 = pnand %p564_p1, %p561_p0 }
   0x9   :  { %569 = shalt.err (!%p566_p2)
}
   0xa   :  { %s570_s6 = scalar_lea.vmem %s27_s27, 8192  ;;  %p575_p4 = scmp.lt.s32.totalorder %s27_s27, %s27_s27 }
   0xb   :  { %p571_p3 = scmp.ne.s32.totalorder %s27_s27, %s570_s6  ;;  %p576_p5 = scmp.lt.s32.totalorder %s570_s6, %s570_s6 }
   0xd   :  { %p577_p6 = por %p576_p5, %p575_p4 }
   0xf   :  { %p578_p7 = pnand %p577_p6, %p571_p3 }
  0x11   :  { %581 = shalt.err (!%p578_p7)
}
  0x12   :  { %s585_s12 = smov 256   ;;  %s586_s13 = smov 16  }
  0x13   :  { %32 = dma.hbm_to_vmem [thread:$0]  %s778_s3, 8192, %s27_s27, [#allocation4], %s585_s12, %s585_s12, %s586_s13  }
  0x14   :  { %582 = dma.done.wait [#allocation4], 8192  }
  0x15   :  { %583 = vsyncadd [#allocation4], 4294959104  ;;  %v587_v1 = vmov 0.0   ;;  %v44_v2 = vld [vmem:[%s776_s1 + $0x8] sm:$0xff]  ;;  %v46_v3 = vld [vmem:[%s776_s1 + $0x18] sm:$0xff]  ;;  %vm63_vm0 = vcmask 261120  }
  0x16   :  { %131 = vmatprep.mubr.f32.mxu0 %v587_v1  ;;  %v43_v4 = vld [vmem:[%s776_s1] sm:$0xff]  ;;  %v448_v5 = vpack.c.bf16 %v46_v3, %v44_v2  ;;  %v45_v6 = vld [vmem:[%s776_s1 + $0x10] sm:$0xff]  ;;  %v48_v7 = vld [vmem:[%s776_s1 + $0x28] sm:$0xff]  ;;  %vm404_vm1 = vcmask 7168  }
  0x17   :  { %v50_v8 = vld [vmem:[%s776_s1 + $0x38] sm:$0xff]  ;;  %v450_v9 = vpack.c.bf16 %v45_v6, %v43_v4  ;;  %v47_v11 = vld [vmem:[%s776_s1 + $0x20] sm:$0xff]  ;;  %v49_v12 = vld [vmem:[%s776_s1 + $0x30] sm:$0xff] }
  0x18   :  { %v452_v10 = vpack.c.bf16 %v50_v8, %v48_v7  ;;  %449 = vmatprep.subr.bf16.mxu0 %v448_v5  ;;  %v141_v13 = vld [vmem:[#allocation3 + $0x8] sm:$0xff]  ;;  %v143_v14 = vld [vmem:[#allocation3 + $0x18] sm:$0xff]  ;;  %v140_v15 = vld [vmem:[#allocation3] sm:$0xff]  ;;  %v454_v16 = vpack.c.bf16 %v49_v12, %v47_v11 }
  0x19   :  { %451 = vmatpush1.bf16.msra.mxu0 %v450_v9  ;;  %v456_v17 = vpack.c.bf16 %v143_v14, %v141_v13  ;;  %v142_v18 = vld [vmem:[#allocation3 + $0x10] sm:$0xff]  ;;  %v145_v19 = vld [vmem:[#allocation3 + $0x28] sm:$0xff]  ;;  %v147_v20 = vld [vmem:[#allocation3 + $0x38] sm:$0xff] }
  0x1a   :  { %453 = vmatprep.subr.bf16.mxu0 %v452_v10  ;;  %v458_v21 = vpack.c.bf16 %v142_v18, %v140_v15  ;;  %v460_v22 = vpack.c.bf16 %v147_v20, %v145_v19  ;;  %v144_v23 = vld [vmem:[#allocation3 + $0x20] sm:$0xff]  ;;  %v146_v24 = vld [vmem:[#allocation3 + $0x30] sm:$0xff]  ;;  %v149_v25 = vld [vmem:[#allocation3 + $0x48] sm:$0xff] }
  0x1b   :  { %457 = vmatprep.subr.bf16.mxu1 %v456_v17  ;;  %v151_v26 = vld [vmem:[#allocation3 + $0x58] sm:$0xff]  ;;  %v462_v27 = vpack.c.bf16 %v146_v24, %v144_v23  ;;  %v148_v30 = vld [vmem:[#allocation3 + $0x40] sm:$0xff]  ;;  %v150_v31 = vld [vmem:[#allocation3 + $0x50] sm:$0xff] }
  0x1c   :  { %459 = vmatpush1.bf16.msra.mxu1 %v458_v21  ;;  %v42_v28 = vld [vmem:[%s775_s0] sm:$0xff]  ;;  %v464_v29 = vpack.c.bf16 %v151_v26, %v149_v25  ;;  %v153_v32 = vld [vmem:[#allocation3 + $0x68] sm:$0xff]  ;;  %v466_v34 = vpack.c.bf16 %v150_v31, %v148_v30  ;;  %v154_v37 = vld [vmem:[#allocation3 + $0x70] sm:$0xff] }
  0x1d   :  { %455 = vmatpush1.bf16.msra.mxu0 %v454_v16  ;;  %461 = vmatprep.subr.bf16.mxu1 %v460_v22  ;;  %v155_v33 = vld [vmem:[#allocation3 + $0x78] sm:$0xff]  ;;  %v152_v36 = vld [vmem:[#allocation3 + $0x60] sm:$0xff]  ;;  %v157_v38 = vld [vmem:[#allocation3 + $0x88] sm:$0xff] }
  0x1e   :  { %v468_v35 = vpack.c.bf16 %v155_v33, %v153_v32  ;;  %v159_v39 = vld [vmem:[#allocation3 + $0x98] sm:$0xff]  ;;  %v470_v40 = vpack.c.bf16 %v154_v37, %v152_v36  ;;  %v156_v42 = vld [vmem:[#allocation3 + $0x80] sm:$0xff]  ;;  %v158_v43 = vld [vmem:[#allocation3 + $0x90] sm:$0xff] }
  0x1f   :  { %v472_v41 = vpack.c.bf16 %v159_v39, %v157_v38  ;;  %v161_v44 = vld [vmem:[#allocation3 + $0xa8] sm:$0xff]  ;;  %v163_v45 = vld [vmem:[#allocation3 + $0xb8] sm:$0xff]  ;;  %v474_v46 = vpack.c.bf16 %v158_v43, %v156_v42  ;;  %v160_v48 = vld [vmem:[#allocation3 + $0xa0] sm:$0xff] }
  0x20   :  { %411 = vmatmul.mubr.msk.f32.vlgmr.msra.gmra.mrb[0].mxu0 %vm63_vm0, %v42_v28  ;;  %463 = vmatpush1.bf16.msra.mxu1 %v462_v27  ;;  %v476_v47 = vpack.c.bf16 %v163_v45, %v161_v44  ;;  %v162_v49 = vld [vmem:[#allocation3 + $0xb0] sm:$0xff]  ;;  %v165_v50 = vld [vmem:[#allocation3 + $0xc8] sm:$0xff]  ;;  %v167_v51 = vld [vmem:[#allocation3 + $0xd8] sm:$0xff] }
  0x21   :  { %465 = vmatprep.subr.bf16.mxu1 %v464_v29  ;;  %v478_v52 = vpack.c.bf16 %v162_v49, %v160_v48  ;;  %v480_v53 = vpack.c.bf16 %v167_v51, %v165_v50  ;;  %v164_v54 = vld [vmem:[#allocation3 + $0xc0] sm:$0xff]  ;;  %v166_v55 = vld [vmem:[#allocation3 + $0xd0] sm:$0xff]  ;;  %v169_v56 = vld [vmem:[#allocation3 + $0xe8] sm:$0xff] }
  0x22   :  { %v171_v57 = vld [vmem:[#allocation3 + $0xf8] sm:$0xff]  ;;  %v482_v58 = vpack.c.bf16 %v166_v55, %v164_v54  ;;  %v168_v60 = vld [vmem:[#allocation3 + $0xe0] sm:$0xff]  ;;  %v170_v61 = vld [vmem:[#allocation3 + $0xf0] sm:$0xff] }
  0x23   :  { %v484_v59 = vpack.c.bf16 %v171_v57, %v169_v56  ;;  %v173_v62 = vld [vmem:[#allocation3 + $0x108] sm:$0xff]  ;;  %v175_v63 = vld [vmem:[#allocation3 + $0x118] sm:$0xff]  ;;  %v486_v0 = vpack.c.bf16 %v170_v61, %v168_v60  ;;  %v172_v2 = vld [vmem:[#allocation3 + $0x100] sm:$0xff] }
  0x24   :  { %467 = vmatpush1.bf16.msra.mxu1 %v466_v34  ;;  %v488_v1 = vpack.c.bf16 %v175_v63, %v173_v62  ;;  %v174_v3 = vld [vmem:[#allocation3 + $0x110] sm:$0xff]  ;;  %v177_v4 = vld [vmem:[#allocation3 + $0x128] sm:$0xff]  ;;  %v179_v5 = vld [vmem:[#allocation3 + $0x138] sm:$0xff] }
  0x25   :  { %469 = vmatprep.subr.bf16.mxu1 %v468_v35  ;;  %v490_v6 = vpack.c.bf16 %v174_v3, %v172_v2  ;;  %v492_v7 = vpack.c.bf16 %v179_v5, %v177_v4  ;;  %v176_v8 = vld [vmem:[#allocation3 + $0x120] sm:$0xff]  ;;  %v178_v9 = vld [vmem:[#allocation3 + $0x130] sm:$0xff]  ;;  %v181_v10 = vld [vmem:[#allocation3 + $0x148] sm:$0xff] }
  0x26   :  { %v183_v11 = vld [vmem:[#allocation3 + $0x158] sm:$0xff]  ;;  %v494_v12 = vpack.c.bf16 %v178_v9, %v176_v8  ;;  %v180_v14 = vld [vmem:[#allocation3 + $0x140] sm:$0xff]  ;;  %v182_v15 = vld [vmem:[#allocation3 + $0x150] sm:$0xff] }
  0x27   :  { %v496_v13 = vpack.c.bf16 %v183_v11, %v181_v10  ;;  %v185_v16 = vld [vmem:[#allocation3 + $0x168] sm:$0xff]  ;;  %v187_v17 = vld [vmem:[#allocation3 + $0x178] sm:$0xff]  ;;  %v498_v18 = vpack.c.bf16 %v182_v15, %v180_v14  ;;  %v184_v20 = vld [vmem:[#allocation3 + $0x160] sm:$0xff] }
  0x28   :  { %471 = vmatpush1.bf16.msra.mxu1 %v470_v40  ;;  %v500_v19 = vpack.c.bf16 %v187_v17, %v185_v16  ;;  %v186_v21 = vld [vmem:[#allocation3 + $0x170] sm:$0xff]  ;;  %v189_v22 = vld [vmem:[#allocation3 + $0x188] sm:$0xff]  ;;  %v191_v23 = vld [vmem:[#allocation3 + $0x198] sm:$0xff] }
  0x29   :  { %473 = vmatprep.subr.bf16.mxu1 %v472_v41  ;;  %v502_v24 = vpack.c.bf16 %v186_v21, %v184_v20  ;;  %v504_v25 = vpack.c.bf16 %v191_v23, %v189_v22  ;;  %v188_v26 = vld [vmem:[#allocation3 + $0x180] sm:$0xff]  ;;  %v190_v27 = vld [vmem:[#allocation3 + $0x190] sm:$0xff]  ;;  %v193_v28 = vld [vmem:[#allocation3 + $0x1a8] sm:$0xff]  ;;  %v53_v22 = vlaneseq }
  0x2a   :  { %v195_v29 = vld [vmem:[#allocation3 + $0x1b8] sm:$0xff]  ;;  %v506_v30 = vpack.c.bf16 %v190_v27, %v188_v26  ;;  %v192_v32 = vld [vmem:[#allocation3 + $0x1a0] sm:$0xff]  ;;  %v194_v33 = vld [vmem:[#allocation3 + $0x1b0] sm:$0xff] }
  0x2b   :  { %v508_v31 = vpack.c.bf16 %v195_v29, %v193_v28  ;;  %v197_v34 = vld [vmem:[#allocation3 + $0x1c8] sm:$0xff]  ;;  %v199_v35 = vld [vmem:[#allocation3 + $0x1d8] sm:$0xff]  ;;  %v510_v36 = vpack.c.bf16 %v194_v33, %v192_v32  ;;  %v196_v38 = vld [vmem:[#allocation3 + $0x1c0] sm:$0xff]  ;;  %v54_v23 = vshrl.u32 %v53_v22, 7 }
  0x2c   :  { %475 = vmatpush1.bf16.msra.mxu1 %v474_v46  ;;  %v512_v37 = vpack.c.bf16 %v199_v35, %v197_v34  ;;  %v198_v39 = vld [vmem:[#allocation3 + $0x1d0] sm:$0xff]  ;;  %v201_v41 = vld [vmem:[#allocation3 + $0x1e8] sm:$0xff]  ;;  %v203_v42 = vld [vmem:[#allocation3 + $0x1f8] sm:$0xff] }
  0x2d   :  { %477 = vmatprep.subr.bf16.mxu1 %v476_v47  ;;  %v514_v40 = vpack.c.bf16 %v198_v39, %v196_v38  ;;  %v516_v43 = vpack.c.bf16 %v203_v42, %v201_v41  ;;  %v200_v44 = vld [vmem:[#allocation3 + $0x1e0] sm:$0xff]  ;;  %v202_v45 = vld [vmem:[#allocation3 + $0x1f0] sm:$0xff]  ;;  %v59_v26 = vsub.s32 1, %v54_v23 }
  0x2e   :  { %v518_v46 = vpack.c.bf16 %v202_v45, %v200_v44  ;;  %v305_v47 = vld [vmem:[%s780_s5 + $0x80] sm:$0xff]  ;;  %v306_v48 = vld [vmem:[%s780_s5 + $0x88] sm:$0xff]  ;;  %v291_v56 = vld [vmem:[%s780_s5 + $0x10] sm:$0xff] }
  0x2f   :  { %v289_v49 = vld [vmem:[%s780_s5] sm:$0xff]  ;;  %v520_v50 = vpack.c.bf16 %v306_v48, %v305_v47  ;;  %v290_v51 = vld [vmem:[%s780_s5 + $0x8] sm:$0xff]  ;;  %v292_v57 = vld [vmem:[%s780_s5 + $0x18] sm:$0xff] }
  0x30   :  { %479 = vmatpush1.bf16.msra.mxu1 %v478_v52  ;;  %v307_v52 = vld [vmem:[%s780_s5 + $0x90] sm:$0xff]  ;;  %v522_v54 = vpack.c.bf16 %v290_v51, %v289_v49  ;;  %v526_v60 = vpack.c.bf16 %v292_v57, %v291_v56  ;;  %v293_v62 = vld [vmem:[%s780_s5 + $0x20] sm:$0xff]  ;;  %v294_v63 = vld [vmem:[%s780_s5 + $0x28] sm:$0xff] }
  0x31   :  { %481 = vmatprep.subr.bf16.mxu1 %v480_v53  ;;  %v308_v53 = vld [vmem:[%s780_s5 + $0x98] sm:$0xff]  ;;  %521 = vmatprep.subr.bf16.mxu0 %v520_v50  ;;  %v530_v2 = vpack.c.bf16 %v294_v63, %v293_v62  ;;  %v295_v4 = vld [vmem:[%s780_s5 + $0x30] sm:$0xff]  ;;  %v297_v10 = vld [vmem:[%s780_s5 + $0x40] sm:$0xff] }
  0x32   :  { %v524_v55 = vpack.c.bf16 %v308_v53, %v307_v52  ;;  %523 = vmatpush3.bf16.msra.mxu0 %v522_v54  ;;  %v296_v5 = vld [vmem:[%s780_s5 + $0x38] sm:$0xff]  ;;  %v298_v11 = vld [vmem:[%s780_s5 + $0x48] sm:$0xff]  ;;  %v299_v16 = vld [vmem:[%s780_s5 + $0x50] sm:$0xff] }
  0x33   :  { %v534_v8 = vpack.c.bf16 %v296_v5, %v295_v4  ;;  %v538_v14 = vpack.c.bf16 %v298_v11, %v297_v10  ;;  %v300_v17 = vld [vmem:[%s780_s5 + $0x58] sm:$0xff]  ;;  %v301_v35 = vld [vmem:[%s780_s5 + $0x60] sm:$0xff]  ;;  %v319_v38 = vld [vmem:[%s780_s5 + $0xf0] sm:$0xff] }
  0x34   :  { %483 = vmatpush1.bf16.msra.mxu1 %v482_v58  ;;  %v309_v58 = vld [vmem:[%s780_s5 + $0xa0] sm:$0xff]  ;;  %525 = vmatprep.subr.bf16.mxu0 %v524_v55  ;;  %v542_v20 = vpack.c.bf16 %v300_v17, %v299_v16  ;;  %v320_v39 = vld [vmem:[%s780_s5 + $0xf8] sm:$0xff]  ;;  %v303_v41 = vld [vmem:[%s780_s5 + $0x70] sm:$0xff] }
  0x35   :  { %485 = vmatprep.subr.bf16.mxu1 %v484_v59  ;;  %v310_v59 = vld [vmem:[%s780_s5 + $0xa8] sm:$0xff]  ;;  %v304_v42 = vld [vmem:[%s780_s5 + $0x78] sm:$0xff]  ;;  %v204_v44 = vld [vmem:[%s779_s4] sm:$0x3] }
  0x36   :  { %v528_v61 = vpack.c.bf16 %v310_v59, %v309_v58  ;;  %527 = vmatpush3.bf16.msra.mxu0 %v526_v60  ;;  %v412_v54 = vld [vmem:[#allocation2] ss:$0 sm:$0xff] }
  0x38   :  { %487 = vmatpush1.bf16.msra.mxu1 %v486_v0  ;;  %v311_v0 = vld [vmem:[%s780_s5 + $0xb0] sm:$0xff]  ;;  %529 = vmatprep.subr.bf16.mxu0 %v528_v61 }
  0x39   :  { %489 = vmatprep.subr.bf16.mxu1 %v488_v1  ;;  %v312_v1 = vld [vmem:[%s780_s5 + $0xb8] sm:$0xff] }
  0x3a   :  { %v532_v3 = vpack.c.bf16 %v312_v1, %v311_v0  ;;  %531 = vmatpush3.bf16.msra.mxu0 %v530_v2 }
  0x3c   :  { %491 = vmatpush1.bf16.msra.mxu1 %v490_v6  ;;  %v313_v6 = vld [vmem:[%s780_s5 + $0xc0] sm:$0xff]  ;;  %533 = vmatprep.subr.bf16.mxu0 %v532_v3 }
  0x3d   :  { %493 = vmatprep.subr.bf16.mxu1 %v492_v7  ;;  %v314_v7 = vld [vmem:[%s780_s5 + $0xc8] sm:$0xff] }
  0x3e   :  { %v536_v9 = vpack.c.bf16 %v314_v7, %v313_v6  ;;  %535 = vmatpush3.bf16.msra.mxu0 %v534_v8 }
  0x40   :  { %495 = vmatpush1.bf16.msra.mxu1 %v494_v12  ;;  %v315_v12 = vld [vmem:[%s780_s5 + $0xd0] sm:$0xff]  ;;  %537 = vmatprep.subr.bf16.mxu0 %v536_v9 }
  0x41   :  { %497 = vmatprep.subr.bf16.mxu1 %v496_v13  ;;  %v316_v13 = vld [vmem:[%s780_s5 + $0xd8] sm:$0xff] }
  0x42   :  { %v540_v15 = vpack.c.bf16 %v316_v13, %v315_v12  ;;  %539 = vmatpush3.bf16.msra.mxu0 %v538_v14 }
  0x44   :  { %499 = vmatpush1.bf16.msra.mxu1 %v498_v18  ;;  %v317_v18 = vld [vmem:[%s780_s5 + $0xe0] sm:$0xff]  ;;  %541 = vmatprep.subr.bf16.mxu0 %v540_v15 }
  0x45   :  { %501 = vmatprep.subr.bf16.mxu1 %v500_v19  ;;  %v318_v19 = vld [vmem:[%s780_s5 + $0xe8] sm:$0xff] }
  0x46   :  { %v544_v21 = vpack.c.bf16 %v318_v19, %v317_v18  ;;  %543 = vmatpush3.bf16.msra.mxu0 %v542_v20 }
  0x48   :  { %503 = vmatpush1.bf16.msra.mxu1 %v502_v24  ;;  %545 = vmatprep.subr.bf16.mxu0 %v544_v21  ;;  %v55_v24 = vsub.s32 0, %v54_v23 }
  0x49   :  { %505 = vmatprep.subr.bf16.mxu1 %v504_v25  ;;  %v51_v25 = vld [vmem:[%s777_s2] sm:$0x3] }
  0x4a   :  { %v56_v27 = vrot.slane %v51_v25, %v55_v24  ;;  %v60_v28 = vrot.slane %v51_v25, %v59_v26  ;;  %v209_v45 = vrot.slane %v204_v44, %v55_v24 }
  0x4c   :  { %507 = vmatpush1.bf16.msra.mxu1 %v506_v30 }
  0x4d   :  { %509 = vmatprep.subr.bf16.mxu1 %v508_v31 }
  0x50   :  { %511 = vmatpush1.bf16.msra.mxu1 %v510_v36  ;;  %v302_v36 = vld [vmem:[%s780_s5 + $0x68] sm:$0xff] }
  0x51   :  { %513 = vmatprep.subr.bf16.mxu1 %v512_v37  ;;  %v546_v37 = vpack.c.bf16 %v302_v36, %v301_v35 }
  0x53   :  { %547 = vmatpush3.bf16.msra.mxu0 %v546_v37 }
  0x54   :  { %515 = vmatpush1.bf16.msra.mxu1 %v514_v40  ;;  %v548_v40 = vpack.c.bf16 %v320_v39, %v319_v38 }
  0x55   :  { %517 = vmatprep.subr.bf16.mxu1 %v516_v43  ;;  %v550_v43 = vpack.c.bf16 %v304_v42, %v303_v41 }
  0x56   :  { %549 = vmatprep.subr.bf16.mxu0 %v548_v40 }
  0x57   :  { %551 = vmatpush3.bf16.msra.mxu0 %v550_v43 }
  0x58   :  { %519 = vmatpush1.bf16.msra.mxu1 %v518_v46  ;;  %v213_v46 = vrot.slane %v204_v44, %v59_v26 }
  0xf3   :  { %v133_v29 = vpop.f32.mrb[0].mxu0 }
  0xf4   :  { %v134_v30 = vadd.f32 %v133_v29, %v56_v27  ;;  %v135_v31 = vpop.f32.mrb[1].mxu0 }
  0xf5   :  { %v136_v32 = vadd.f32 %v135_v31, %v60_v28 }
  0xf6   :  { %v138_v34 = vmax.f32 %v134_v30, 0.0 }
  0xf7   :  { %v139_v33 = vmax.f32 %v136_v32, 0.0 }
  0xf9   :  { %280 = vmatprep.mubr.f32.mxu1 %v139_v33 }
  0xfa   :  { %281 = vmatmul.mubr.f32.vlgmr.msra.gmra.mrb[0].mxu1 %v138_v34 }
 0x1cd   :  { %v282_v47 = vpop.f32.mrb[0].mxu1 }
 0x1ce   :  { %v283_v48 = vadd.f32 %v282_v47, %v209_v45  ;;  %v284_v49 = vpop.f32.mrb[1].mxu1 }
 0x1cf   :  { %v285_v50 = vadd.f32 %v284_v49, %v213_v46 }
 0x1d0   :  { %v287_v52 = vmax.f32 %v283_v48, 0.0 }
 0x1d1   :  { %v288_v51 = vmax.f32 %v285_v50, 0.0 }
 0x1d3   :  { %392 = vmatprep.mubr.f32.mxu0 %v288_v51 }
 0x1d4   :  { %393 = vmatmul.mubr.f32.vlgmr.msra.gmra.mrb[2].mxu0 %v287_v52 }
 0x2a7   :  { %v445_v53 = vpop.f32.mrb[2].mxu0 }
 0x2a8   :  { %v446_v55 = vpop.f32.mrb[3].mxu0 }
 0x2a9   :  { %v447_v56 = vadd.f32 %v446_v55, %v445_v53 }
 0x2ab   :  { %v395_v57 = vadd.f32 %v447_v56, %v412_v54 }
 0x2ad   :  { %v398_v58 = vsub.f32 0.0, %v395_v57 }
 0x2af   :  { %v399_v59 = vmul.f32 1.442695, %v398_v58 }
 0x2b1   :  { %556 = vpow2.f32 %v399_v59 }
 0x2bb   :  { %v557_v60 = vpop.eup %556 }
 0x2bc   :  { %v401_v61 = vadd.f32 1.0, %v557_v60 }
 0x2be   :  { %558 = vrcp.f32 %v401_v61 }
 0x2c8   :  { %v559_v62 = vpop.eup %558 }
 0x2c9   :  { %405 = vst.msk [vmem:[%s782_s7] sm:$0xff] %vm404_vm1, %v559_v62 }
 0x2ca   :  { %410 = vsyncpa [#allocation4], 1 }

</bundles_post_ra>
